<compile_context>
chip_gen: v7x
topology: tpu7x:2x2x1
jax: 0.10.0
libtpu: 0.0.40
codegen_flags: <defaults>
</compile_context>

<pallas_src>
import jax
import jax.numpy as jnp
from jax.experimental import pallas as pl
from jax.experimental.pallas import tpu as pltpu


def dqn_kernel(xT_ref, w1_ref, b1_ref, w2_ref, b2_ref, w3_ref, b3_ref, oT_ref):
    """One batch tile. xT: [S, TB] bf16; w_i: [out, in] bf16; b_i: [out, 1] f32."""
    x = xT_ref[...]                                           # [S, TB], lane-dense

    # Layer 1: Linear(state_dim -> 64) + ReLU.  MXU matmul, fp32 accumulate.
    h1 = jnp.dot(w1_ref[...], x, preferred_element_type=jnp.float32)
    h1 = jnp.maximum(h1 + b1_ref[...], 0.0)                   # fp32 epilogue (v5e-safe)

    # Layer 2: Linear(64 -> 128) + ReLU.
    h2 = jnp.dot(w2_ref[...], h1.astype(jnp.bfloat16),
                 preferred_element_type=jnp.float32)
    h2 = jnp.maximum(h2 + b2_ref[...], 0.0)

    # Layer 3: Linear(128 -> action_dim), no activation.
    out = jnp.dot(w3_ref[...], h2.astype(jnp.bfloat16),
                  preferred_element_type=jnp.float32)
    oT_ref[...] = (out + b3_ref[...]).astype(oT_ref.dtype)    # [A, TB], lane-dense store


def dqn_forward_pallas(x, params, *, tile_b=2048):
    """x: [B, state_dim] float32 -> [B, action_dim] float32 via the Pallas kernel."""
    B, S = x.shape
    H1 = params["w1"].shape[0]
    H2 = params["w2"].shape[0]
    A = params["w3"].shape[0]

    # Batch tile: as large as possible (amortizes per-step overhead) but never
    # larger than the 128-padded batch; always a multiple of 128 so the lane
    # axis stays dense.
    tb = min(tile_b, 128 * pl.cdiv(B, 128))
    num_tiles = pl.cdiv(B, tb)
    Bp = num_tiles * tb

    # Feature-major, bf16 input slab [S, Bp]: pad + cast + transpose fuse into a
    # single cheap XLA pass on a tiny [B, S] array; bf16 halves the HBM read
    # traffic of the dominant streaming operand (x).
    xT = jnp.pad(x, ((0, Bp - B), (0, 0))).astype(jnp.bfloat16).T
    w1 = params["w1"].astype(jnp.bfloat16)
    w2 = params["w2"].astype(jnp.bfloat16)
    w3 = params["w3"].astype(jnp.bfloat16)
    b1, b2, b3 = params["b1"], params["b2"], params["b3"]     # fp32 [out, 1]

    def resident(shape):
        # Constant index_map: block index never changes, so the weights/biases
        # stay resident in VMEM across the whole batch grid (no per-tile re-DMA).
        return pl.BlockSpec(shape, lambda i: (0, 0))

    outT = pl.pallas_call(
        dqn_kernel,
        out_shape=jax.ShapeDtypeStruct((A, Bp), jnp.float32),
        grid=(num_tiles,),
        in_specs=[
            pl.BlockSpec((S, tb), lambda i: (0, i)),          # x tile, pipelined
            resident((H1, S)), resident((H1, 1)),
            resident((H2, H1)), resident((H2, 1)),
            resident((A, H2)), resident((A, 1)),
        ],
        out_specs=pl.BlockSpec((A, tb), lambda i: (0, i)),
        compiler_params=pltpu.CompilerParams(
            dimension_semantics=("parallel",),   # v7x: shard batch tiles over 2 TCs
            vmem_limit_bytes=32 * 1024 * 1024,   # explicit, safe on all generations
        ),
    )(xT, w1, b1, w2, b2, w3, b3)

    return outT[:, :B].T


def dqn_forward(x, params, *, small_batch_threshold=256, tile_b=2048):
    """Dispatch: tiny action-selection batches use the fused XLA path (launch +
    DMA setup dominates there); replay-buffer batches use the Pallas kernel."""
    if x.shape[0] < small_batch_threshold:
        return dqn_reference(x, params)
    return dqn_forward_pallas(x, params, tile_b=tile_b)


def init_params(key, state_dim, action_dim):
    """PyTorch nn.Linear-style init; weights kept in [out, in], biases [out, 1]."""
    def linear_init(k, fan_in, fan_out):
        kw, kb = jax.random.split(k)
        bound = 1.0 / jnp.sqrt(jnp.float32(fan_in))
        w = jax.random.uniform(kw, (fan_out, fan_in), jnp.float32, -bound, bound)
        b = jax.random.uniform(kb, (fan_out, 1), jnp.float32, -bound, bound)
        return w, b

    k1, k2, k3 = jax.random.split(key, 3)
    w1, b1 = linear_init(k1, state_dim, 64)
    w2, b2 = linear_init(k2, 64, 128)
    w3, b3 = linear_init(k3, 128, action_dim)
    return {"w1": w1, "b1": b1, "w2": w2, "b2": b2, "w3": w3, "b3": b3}


def dqn_reference(x, params):
    """Pure-fp32 JAX reference (also the small-batch fast path)."""
    h1 = jnp.maximum(x @ params["w1"].T + params["b1"].T, 0.0)
    h2 = jnp.maximum(h1 @ params["w2"].T + params["b2"].T, 0.0)
    return h2 @ params["w3"].T + params["b3"].T


def dqn_reference_mixed(x, params):
    """Reference mirroring the kernel's bf16-operand / fp32-accumulate math."""
    bf = jnp.bfloat16
    xT = x.astype(bf).T
    h1 = jnp.maximum(jnp.dot(params["w1"].astype(bf), xT,
                             preferred_element_type=jnp.float32) + params["b1"], 0.0)
    h2 = jnp.maximum(jnp.dot(params["w2"].astype(bf), h1.astype(bf),
                             preferred_element_type=jnp.float32) + params["b2"], 0.0)
    out = jnp.dot(params["w3"].astype(bf), h2.astype(bf),
                  preferred_element_type=jnp.float32) + params["b3"]
    return out.T


if __name__ == "__main__":
    key = jax.random.PRNGKey(0)
    k_params, k_small, k_big = jax.random.split(key, 3)

    state_dim = 4      # CartPole-style observation
    action_dim = 2
    params = init_params(k_params, state_dim, action_dim)

    # 1) Tiny batch, forced through the Pallas kernel (pads to one 128-row tile).
    x_small = jax.random.normal(k_small, (2, state_dim), jnp.float32)
    out_small = jax.block_until_ready(dqn_forward_pallas(x_small, params))
    assert out_small.shape == (2, action_dim), out_small.shape
    assert jnp.allclose(out_small, dqn_reference_mixed(x_small, params),
                        atol=1e-3, rtol=1e-3)
    assert jnp.allclose(out_small, dqn_reference(x_small, params),
                        atol=5e-2, rtol=5e-2)

    # 2) Replay-buffer-sized batch exercising the multi-tile batch grid
    #    (2500 rows -> 2 tiles of 2048, last tile padded).
    x_big = jax.random.normal(k_big, (2500, state_dim), jnp.float32)
    out_big = jax.block_until_ready(dqn_forward(x_big, params))
    assert out_big.shape == (2500, action_dim), out_big.shape
    assert jnp.allclose(out_big, dqn_reference_mixed(x_big, params),
                        atol=1e-3, rtol=1e-3)
    assert jnp.allclose(out_big, dqn_reference(x_big, params),
                        atol=5e-2, rtol=5e-2)

    print("KERNEL_OK")
</pallas_src>

<mosaic_0001>
module attributes {stable_mosaic.version = 11 : i64} {
  func.func @dqn_kernel(%arg0: i32, %arg1: memref<4x128xbf16, #tpu.memory_space<vmem>>, %arg2: memref<64x4xbf16, #tpu.memory_space<vmem>>, %arg3: memref<64x1xf32, #tpu.memory_space<vmem>>, %arg4: memref<128x64xbf16, #tpu.memory_space<vmem>>, %arg5: memref<128x1xf32, #tpu.memory_space<vmem>>, %arg6: memref<2x128xbf16, #tpu.memory_space<vmem>>, %arg7: memref<2x1xf32, #tpu.memory_space<vmem>>, %arg8: memref<2x128xf32, #tpu.memory_space<vmem>>) attributes {dimension_semantics = [#tpu.dimension_semantics<parallel>], iteration_bounds = array<i64: 1>, scalar_prefetch = 0 : i64, scratch_operands = 0 : i64, tpu.core_type = #tpu.core_type<tc>, window_params = [{transform_indices = @transform_0, window_bounds = array<i64: 4, 128>}, {pipeline_mode = #tpu.pipeline_mode<synchronous>, transform_indices = @transform_1, window_bounds = array<i64: 64, 4>}, {pipeline_mode = #tpu.pipeline_mode<synchronous>, transform_indices = @transform_2, window_bounds = array<i64: 64, 1>}, {pipeline_mode = #tpu.pipeline_mode<synchronous>, transform_indices = @transform_3, window_bounds = array<i64: 128, 64>}, {pipeline_mode = #tpu.pipeline_mode<synchronous>, transform_indices = @transform_4, window_bounds = array<i64: 128, 1>}, {pipeline_mode = #tpu.pipeline_mode<synchronous>, transform_indices = @transform_5, window_bounds = array<i64: 2, 128>}, {pipeline_mode = #tpu.pipeline_mode<synchronous>, transform_indices = @transform_6, window_bounds = array<i64: 2, 1>}, {transform_indices = @transform_7, window_bounds = array<i64: 2, 128>}]} {
    %c0 = arith.constant 0 : index
    %c0_0 = arith.constant 0 : index
    %0 = vector.load %arg1[%c0, %c0_0] : memref<4x128xbf16, #tpu.memory_space<vmem>>, vector<4x128xbf16>
    %c0_1 = arith.constant 0 : index
    %c0_2 = arith.constant 0 : index
    %1 = vector.load %arg2[%c0_1, %c0_2] : memref<64x4xbf16, #tpu.memory_space<vmem>>, vector<64x4xbf16>
    %cst = arith.constant dense<0.000000e+00> : vector<64x128xf32>
    %2 = tpu.matmul %1, %0, %cst {dimension_numbers = #tpu.dot_dimension_numbers<[1], [0], [0], [1], [0, 0, 1, 1], [], []>} : vector<64x4xbf16>, vector<4x128xbf16>, vector<64x128xf32> -> vector<64x128xf32>
    %c0_3 = arith.constant 0 : index
    %c0_4 = arith.constant 0 : index
    %3 = vector.load %arg3[%c0_3, %c0_4] : memref<64x1xf32, #tpu.memory_space<vmem>>, vector<64x1xf32>
    %4 = vector.broadcast %3 : vector<64x1xf32> to vector<64x128xf32>
    %5 = arith.addf %2, %4 : vector<64x128xf32>
    %cst_5 = arith.constant 0.000000e+00 : f32
    %6 = vector.broadcast %cst_5 : f32 to vector<64x128xf32>
    %7 = arith.maximumf %5, %6 : vector<64x128xf32>
    %c0_6 = arith.constant 0 : index
    %c0_7 = arith.constant 0 : index
    %8 = vector.load %arg4[%c0_6, %c0_7] : memref<128x64xbf16, #tpu.memory_space<vmem>>, vector<128x64xbf16>
    %9 = arith.truncf %7 : vector<64x128xf32> to vector<64x128xbf16>
    %cst_8 = arith.constant dense<0.000000e+00> : vector<128x128xf32>
    %10 = tpu.matmul %8, %9, %cst_8 {dimension_numbers = #tpu.dot_dimension_numbers<[1], [0], [0], [1], [0, 0, 1, 1], [], []>} : vector<128x64xbf16>, vector<64x128xbf16>, vector<128x128xf32> -> vector<128x128xf32>
    %c0_9 = arith.constant 0 : index
    %c0_10 = arith.constant 0 : index
    %11 = vector.load %arg5[%c0_9, %c0_10] : memref<128x1xf32, #tpu.memory_space<vmem>>, vector<128x1xf32>
    %12 = vector.broadcast %11 : vector<128x1xf32> to vector<128x128xf32>
    %13 = arith.addf %10, %12 : vector<128x128xf32>
    %cst_11 = arith.constant 0.000000e+00 : f32
    %14 = vector.broadcast %cst_11 : f32 to vector<128x128xf32>
    %15 = arith.maximumf %13, %14 : vector<128x128xf32>
    %c0_12 = arith.constant 0 : index
    %c0_13 = arith.constant 0 : index
    %16 = vector.load %arg6[%c0_12, %c0_13] : memref<2x128xbf16, #tpu.memory_space<vmem>>, vector<2x128xbf16>
    %17 = arith.truncf %15 : vector<128x128xf32> to vector<128x128xbf16>
    %cst_14 = arith.constant dense<0.000000e+00> : vector<2x128xf32>
    %18 = tpu.matmul %16, %17, %cst_14 {dimension_numbers = #tpu.dot_dimension_numbers<[1], [0], [0], [1], [0, 0, 1, 1], [], []>} : vector<2x128xbf16>, vector<128x128xbf16>, vector<2x128xf32> -> vector<2x128xf32>
    %c0_15 = arith.constant 0 : index
    %c0_16 = arith.constant 0 : index
    %19 = vector.load %arg7[%c0_15, %c0_16] : memref<2x1xf32, #tpu.memory_space<vmem>>, vector<2x1xf32>
    %20 = vector.broadcast %19 : vector<2x1xf32> to vector<2x128xf32>
    %21 = arith.addf %18, %20 : vector<2x128xf32>
    %c0_17 = arith.constant 0 : index
    %c0_18 = arith.constant 0 : index
    %22 = vector.load %arg8[%c0_17, %c0_18] : memref<2x128xf32, #tpu.memory_space<vmem>>, vector<2x128xf32>
    tpu.vector_store %arg8[%c0_17, %c0_18], %21 {strides = array<i32>} : memref<2x128xf32, #tpu.memory_space<vmem>>, vector<2x128xf32>,
    return
  }
  func.func @transform_0(%arg0: i32) -> (i32, i32) {
    %c0_i32 = arith.constant 0 : i32
    %c0_i32_0 = arith.constant 0 : i32
    return %c0_i32, %arg0 : i32, i32
  }
  func.func @transform_1(%arg0: i32) -> (i32, i32) {
    %c0_i32 = arith.constant 0 : i32
    %c0_i32_0 = arith.constant 0 : i32
    %c0_i32_1 = arith.constant 0 : i32
    return %c0_i32, %c0_i32_0 : i32, i32
  }
  func.func @transform_2(%arg0: i32) -> (i32, i32) {
    %c0_i32 = arith.constant 0 : i32
    %c0_i32_0 = arith.constant 0 : i32
    %c0_i32_1 = arith.constant 0 : i32
    return %c0_i32, %c0_i32_0 : i32, i32
  }
  func.func @transform_3(%arg0: i32) -> (i32, i32) {
    %c0_i32 = arith.constant 0 : i32
    %c0_i32_0 = arith.constant 0 : i32
    %c0_i32_1 = arith.constant 0 : i32
    return %c0_i32, %c0_i32_0 : i32, i32
  }
  func.func @transform_4(%arg0: i32) -> (i32, i32) {
    %c0_i32 = arith.constant 0 : i32
    %c0_i32_0 = arith.constant 0 : i32
    %c0_i32_1 = arith.constant 0 : i32
    return %c0_i32, %c0_i32_0 : i32, i32
  }
  func.func @transform_5(%arg0: i32) -> (i32, i32) {
    %c0_i32 = arith.constant 0 : i32
    %c0_i32_0 = arith.constant 0 : i32
    %c0_i32_1 = arith.constant 0 : i32
    return %c0_i32, %c0_i32_0 : i32, i32
  }
  func.func @transform_6(%arg0: i32) -> (i32, i32) {
    %c0_i32 = arith.constant 0 : i32
    %c0_i32_0 = arith.constant 0 : i32
    %c0_i32_1 = arith.constant 0 : i32
    return %c0_i32, %c0_i32_0 : i32, i32
  }
  func.func @transform_7(%arg0: i32) -> (i32, i32) {
    %c0_i32 = arith.constant 0 : i32
    %c0_i32_0 = arith.constant 0 : i32
    return %c0_i32, %arg0 : i32, i32
  }
}

</mosaic_0001>

<bundles_post_ra>
// kernel: tpu_custom_call.1
= control target key start
LH: loop header
LB: loop body
LE: loop exit
PB: predicated region body
PF: predicated region fallthrough
CT: control target
= control target key end

     0   :  { %vm118_vm0 = vcmask 1041408   ;;  %vm105_vm1 = vcmask 31744   ;;  %v706_v5 = vmov 0   ;;  %s900_s0 = inlined_call_operand.vmem [shape: bf16[4,128], index: 0, kind: input, shape index: {}]   ;;  %s901_s1 = inlined_call_operand.vmem [shape: bf16[64,4], index: 1, kind: input, shape index: {}]   ;;  %s902_s2 = inlined_call_operand.vmem [shape: f32[64,1], index: 2, kind: input, shape index: {}]   ;;  %s903_s3 = inlined_call_operand.vmem [shape: bf16[128,64], index: 3, kind: input, shape index: {}]   ;;  %s904_s4 = inlined_call_operand.vmem [shape: f32[128,1], index: 4, kind: input, shape index: {}]   ;;  %s905_s5 = inlined_call_operand.vmem [shape: bf16[2,128], index: 5, kind: input, shape index: {}]   ;;  %s906_s6 = inlined_call_operand.vmem [shape: f32[2,1], index: 6, kind: input, shape index: {}]   ;;  %s907_s7 = inlined_call_operand.hbm [shape: f32[2,128], index: 7, kind: output, shape index: {}]  }
   0x1   :  { %v28_v0 = vld [vmem:[%s900_s0] sm:$0x3]  ;;  %v671_v3 = vld [vmem:[%s901_s1 + $0x8] sm:$0xff]   ;;  %v672_v4 = vld [vmem:[%s901_s1 + $0x10] sm:$0xff]   ;;  %668 = vset.pattern.permute.xlu0 %v706_v5  ;;  %669 = vset.pattern.permute.xlu1 %v706_v5 }
   0x2   :  { %v670_v1 = vld [vmem:[%s901_s1] sm:$0xff]   ;;  %663 = vmatprep.subr.msk.bf16.mxu0 %vm118_vm0, %v28_v0  ;;  %v120_v2 = vsel %vm118_vm0, %v28_v0, 0  ;;  %v39_v7 = vld [vmem:[%s902_s2 + $0x10] sm:$0xff]  ;;  %v38_v8 = vld [vmem:[%s902_s2 + $0x8] sm:$0xff] }
   0x3   :  { %610 = vmatpush3.bf16.msra.mxu0 %v120_v2  ;;  %611 = vmatprep.mubr.msk.bf16.mxu0 %vm105_vm1, %v670_v1  ;;  %v37_v6 = vld [vmem:[%s902_s2] sm:$0xff]  ;;  %v40_v9 = vld [vmem:[%s902_s2 + $0x18] sm:$0xff]  ;;  %v42_v12 = vld [vmem:[%s902_s2 + $0x28] sm:$0xff] }
   0x4   :  { %47 = vperm.xlu0 %668, %v37_v6   ;;  %57 = vperm.xlu1 %669, %v39_v7   ;;  %v673_v10 = vld [vmem:[%s901_s1 + $0x18] sm:$0xff]   ;;  %v41_v11 = vld [vmem:[%s902_s2 + $0x20] sm:$0xff]  ;;  %v43_v13 = vld [vmem:[%s902_s2 + $0x30] sm:$0xff] }
   0x5   :  { %v44_v14 = vld [vmem:[%s902_s2 + $0x38] sm:$0xff]  ;;  %v215_v15 = vld [vmem:[%s904_s4] sm:$0xff] }
   0x6   :  { %612 = vmatmul.mubr.msk.bf16.vlgmr.msra.gmra.mrb[0].mxu0 %vm105_vm1, %v671_v3 }
   0x7   :  { %615 = vmatprep.mubr.msk.bf16.mxu0 %vm105_vm1, %v672_v4 }
   0x8   :  { %52 = vperm.xlu0 %668, %v38_v8   ;;  %62 = vperm.xlu1 %669, %v40_v9  }
   0xc   :  { %67 = vperm.xlu0 %668, %v41_v11   ;;  %72 = vperm.xlu1 %669, %v42_v12  }
   0xe   :  { %616 = vmatmul.mubr.msk.bf16.gmra.mrb[4].mxu0 %vm105_vm1, %v673_v10 }
  0x10   :  { %77 = vperm.xlu0 %668, %v43_v13   ;;  %82 = vperm.xlu1 %669, %v44_v14  }
  0x11   :  { %12 = vsyncpa [#allocation3], 0  ;;  %v216_v16 = vld [vmem:[%s904_s4 + $0x8] sm:$0xff]  ;;  %v217_v17 = vld [vmem:[%s904_s4 + $0x10] sm:$0xff]  ;;  %vm351_vm2 = vcmask 523264   ;;  %v707_v12 = vmov 0.0  }
  0x12   :  { %v218_v18 = vld [vmem:[%s904_s4 + $0x18] sm:$0xff]  ;;  %v219_v19 = vld [vmem:[%s904_s4 + $0x20] sm:$0xff]  ;;  %v220_v20 = vld [vmem:[%s904_s4 + $0x28] sm:$0xff]  ;;  %643 = vmatprep.subr.bf16.mxu0 %v707_v12  ;;  %vm708_vm3 = vmmov 0   ;;  %s709_s23 = smov [#allocation2]  }
  0x13   :  { %v221_v21 = vld [vmem:[%s904_s4 + $0x30] sm:$0xff]  ;;  %v222_v22 = vld [vmem:[%s904_s4 + $0x38] sm:$0xff]  ;;  %v223_v23 = vld [vmem:[%s904_s4 + $0x40] sm:$0xff]  ;;  %659 = vmatprep.mubr.msk.bf16.mxu0 %vm708_vm3, %v707_v12  ;;  %s551_s24 = sshll.u32 %s709_s23, 4  ;;  %s552_s24 = int_to_ptr.vmem [resolvable:$true] %s551_s24 }
  0x14   :  { %233 = vperm.xlu0 %668, %v215_v15   ;;  %238 = vperm.xlu1 %669, %v216_v16   ;;  %v224_v24 = vld [vmem:[%s904_s4 + $0x48] sm:$0xff]  ;;  %v225_v25 = vld [vmem:[%s904_s4 + $0x50] sm:$0xff]  ;;  %v226_v26 = vld [vmem:[%s904_s4 + $0x58] sm:$0xff]  ;;  %s682_s25 = scalar_lea.vmem %s552_s24, 32  ;;  %p687_p1 = scmp.lt.s32.totalorder %s552_s24, %s552_s24 }
  0x15   :  { %v227_v27 = vld [vmem:[%s904_s4 + $0x60] sm:$0xff]  ;;  %v228_v28 = vld [vmem:[%s904_s4 + $0x68] sm:$0xff]  ;;  %v229_v29 = vld [vmem:[%s904_s4 + $0x70] sm:$0xff]  ;;  %p683_p0 = scmp.ne.s32.totalorder %s552_s24, %s682_s25  ;;  %p688_p2 = scmp.lt.s32.totalorder %s682_s25, %s682_s25 }
  0x16   :  { %v230_v30 = vld [vmem:[%s904_s4 + $0x78] sm:$0xff]  ;;  %v498_v31 = vld [vmem:[%s906_s6] sm:$0x3]  ;;  %v675_v5 = vld [vmem:[%s903_s3 + $0x8] sm:$0xff]  }
  0x17   :  { %v674_v32 = vld [vmem:[%s903_s3] sm:$0xff]   ;;  %v676_v6 = vld [vmem:[%s903_s3 + $0x10] sm:$0xff]   ;;  %v677_v7 = vld [vmem:[%s903_s3 + $0x18] sm:$0xff]   ;;  %p689_p3 = por %p688_p2, %p687_p1 }
  0x18   :  { %243 = vperm.xlu0 %668, %v217_v17   ;;  %248 = vperm.xlu1 %669, %v218_v18   ;;  %v678_v8 = vld [vmem:[%s903_s3 + $0x20] sm:$0xff]   ;;  %v679_v9 = vld [vmem:[%s903_s3 + $0x28] sm:$0xff]   ;;  %v680_v10 = vld [vmem:[%s903_s3 + $0x30] sm:$0xff]  }
  0x19   :  { %627 = vmatprep.mubr.msk.bf16.mxu1 %vm351_vm2, %v674_v32  ;;  %v681_v11 = vld [vmem:[%s903_s3 + $0x38] sm:$0xff]   ;;  %p690_p4 = pnand %p689_p3, %p683_p0 }
  0x1c   :  { %253 = vperm.xlu0 %668, %v219_v19   ;;  %258 = vperm.xlu1 %669, %v220_v20  }
  0x20   :  { %263 = vperm.xlu0 %668, %v221_v21   ;;  %268 = vperm.xlu1 %669, %v222_v22  }
  0x24   :  { %273 = vperm.xlu0 %668, %v223_v23   ;;  %278 = vperm.xlu1 %669, %v224_v24  }
  0x28   :  { %283 = vperm.xlu0 %668, %v225_v25   ;;  %288 = vperm.xlu1 %669, %v226_v26  }
  0x2c   :  { %293 = vperm.xlu0 %668, %v227_v27   ;;  %298 = vperm.xlu1 %669, %v228_v28  }
  0x30   :  { %303 = vperm.xlu0 %668, %v229_v29   ;;  %308 = vperm.xlu1 %669, %v230_v30  }
  0x34   :  { %501 = vperm.xlu0 %668, %v498_v31  }
  0x83   :  { %v48_v33 = vpop.permute.xlu0 %47  ;;  %v58_v34 = vpop.permute.xlu1 %57 }
  0x87   :  { %v53_v35 = vpop.permute.xlu0 %52  ;;  %v63_v36 = vpop.permute.xlu1 %62 }
  0x8b   :  { %v68_v40 = vpop.permute.xlu0 %67  ;;  %v73_v45 = vpop.permute.xlu1 %72 }
  0x8f   :  { %v78_v52 = vpop.permute.xlu0 %77  ;;  %v83_v57 = vpop.permute.xlu1 %82 }
  0x93   :  { %v234_v13 = vpop.permute.xlu0 %233  ;;  %v239_v14 = vpop.permute.xlu1 %238 }
  0x97   :  { %v244_v15 = vpop.permute.xlu0 %243  ;;  %v249_v16 = vpop.permute.xlu1 %248 }
  0x9b   :  { %v254_v17 = vpop.permute.xlu0 %253  ;;  %v259_v18 = vpop.permute.xlu1 %258 }
  0x9f   :  { %v264_v19 = vpop.permute.xlu0 %263  ;;  %v269_v23 = vpop.permute.xlu1 %268 }
  0xa3   :  { %v274_v31 = vpop.permute.xlu0 %273 }
  0xd9   :  { %v613_v37 = vpop.f32.mrb[0].mxu0 }
  0xda   :  { %v165_v38 = vadd.f32 %v613_v37, %v58_v34  ;;  %v156_v39 = vpop.f32.mrb[1].mxu0 }
  0xdb   :  { %v157_v41 = vadd.f32 %v156_v39, %v48_v33  ;;  %v614_v42 = vpop.f32.mrb[2].mxu0 }
  0xdc   :  { %v168_v43 = vadd.f32 %v614_v42, %v63_v36  ;;  %v159_v44 = vpop.f32.mrb[3].mxu0  ;;  %v189_v47 = vmax.f32 %v165_v38, 0.0 }
  0xdd   :  { %v160_v46 = vadd.f32 %v159_v44, %v53_v35  ;;  %v187_v49 = vmax.f32 %v157_v41, 0.0  ;;  %v279_v35 = vpop.permute.xlu1 %278  ;;  %v284_v44 = vpop.permute.xlu0 %283 }
  0xde   :  { %v190_v48 = vmax.f32 %v168_v43, 0.0 }
  0xdf   :  { %v188_v50 = vmax.f32 %v160_v46, 0.0 }
  0xe0   :  { %v212_v51 = vpack.c.bf16 %v190_v48, %v189_v47 }
  0xe1   :  { %v617_v53 = vpop.f32.mrb[4].mxu0  ;;  %v211_v54 = vpack.c.bf16 %v188_v50, %v187_v49  ;;  %v289_v48 = vpop.permute.xlu1 %288 }
  0xe2   :  { %v181_v55 = vadd.f32 %v617_v53, %v78_v52  ;;  %v172_v56 = vpop.f32.mrb[5].mxu0 }
  0xe3   :  { %v173_v58 = vadd.f32 %v172_v56, %v68_v40  ;;  %v618_v59 = vpop.f32.mrb[6].mxu0  ;;  %619 = vmatprep.subr.bf16.mxu1 %v211_v54  ;;  %v294_v56 = vpop.permute.xlu0 %293 }
  0xe4   :  { %v184_v60 = vadd.f32 %v618_v59, %v83_v57  ;;  %v175_v61 = vpop.f32.mrb[7].mxu0  ;;  %620 = vmatpush3.bf16.msra.mxu1 %v211_v54  ;;  %v193_v63 = vmax.f32 %v181_v55, 0.0 }
  0xe5   :  { %v176_v62 = vadd.f32 %v175_v61, %v73_v45  ;;  %621 = vmatprep.subr.bf16.mxu1 %v212_v51  ;;  %v191_v1 = vmax.f32 %v173_v58, 0.0  ;;  %v299_v61 = vpop.permute.xlu1 %298 }
  0xe6   :  { %v194_v0 = vmax.f32 %v184_v60, 0.0 }
  0xe7   :  { %v192_v2 = vmax.f32 %v176_v62, 0.0 }
  0xe8   :  { %v214_v3 = vpack.c.bf16 %v194_v0, %v193_v63  ;;  %622 = vmatpush3.bf16.msra.mxu1 %v212_v51 }
  0xe9   :  { %v213_v4 = vpack.c.bf16 %v192_v2, %v191_v1 }
  0xeb   :  { %623 = vmatprep.subr.bf16.mxu1 %v213_v4 }
  0xec   :  { %624 = vmatpush3.bf16.msra.mxu1 %v213_v4  ;;  %v304_v4 = vpop.permute.xlu0 %303 }
  0xed   :  { %625 = vmatprep.subr.bf16.mxu1 %v214_v3 }
  0xf0   :  { %626 = vmatpush3.bf16.msra.mxu1 %v214_v3 }
  0xf3   :  { %628 = vmatmul.mubr.msk.bf16.vlgmr.msra.gmra.mrb[0].mxu1 %vm351_vm2, %v675_v5 }
  0xf4   :  { %631 = vmatprep.mubr.msk.bf16.mxu1 %vm351_vm2, %v676_v6 }
  0xfb   :  { %632 = vmatmul.mubr.msk.bf16.gmra.mrb[4].mxu1 %vm351_vm2, %v677_v7 }
  0xfc   :  { %635 = vmatprep.mubr.msk.bf16.mxu1 %vm351_vm2, %v678_v8 }
 0x103   :  { %636 = vmatmul.mubr.msk.bf16.gmra.mrb[8].mxu1 %vm351_vm2, %v679_v9  ;;  %v309_v9 = vpop.permute.xlu1 %308 }
 0x104   :  { %639 = vmatprep.mubr.msk.bf16.mxu1 %vm351_vm2, %v680_v10 }
 0x10b   :  { %640 = vmatmul.mubr.msk.bf16.gmra.mrb[12].mxu1 %vm351_vm2, %v681_v11 }
 0x1c6   :  { %v629_v20 = vpop.f32.mrb[0].mxu1 }
 0x1c7   :  { %v419_v21 = vadd.f32 %v629_v20, %v244_v15  ;;  %v410_v22 = vpop.f32.mrb[1].mxu1 }
 0x1c8   :  { %v411_v24 = vadd.f32 %v410_v22, %v234_v13  ;;  %v630_v25 = vpop.f32.mrb[2].mxu1  ;;  %v489_v22 = vld [vmem:[%s905_s5] sm:$0x1] }
 0x1c9   :  { %v422_v26 = vadd.f32 %v630_v25, %v249_v16  ;;  %v413_v27 = vpop.f32.mrb[3].mxu1  ;;  %v475_v29 = vmax.f32 %v419_v21, 0.0 }
 0x1ca   :  { %v414_v28 = vadd.f32 %v413_v27, %v239_v14  ;;  %v473_v32 = vmax.f32 %v411_v24, 0.0 }
 0x1cb   :  { %v476_v30 = vmax.f32 %v422_v26, 0.0 }
 0x1cc   :  { %v474_v33 = vmax.f32 %v414_v28, 0.0 }
 0x1cd   :  { %v491_v34 = vpack.c.bf16 %v476_v30, %v475_v29 }
 0x1ce   :  { %v490_v36 = vpack.c.bf16 %v474_v33, %v473_v32  ;;  %v633_v37 = vpop.f32.mrb[4].mxu1 }
 0x1cf   :  { %v435_v38 = vadd.f32 %v633_v37, %v264_v19  ;;  %v426_v39 = vpop.f32.mrb[5].mxu1 }
 0x1d0   :  { %v427_v40 = vadd.f32 %v426_v39, %v254_v17  ;;  %v634_v41 = vpop.f32.mrb[6].mxu1  ;;  %644 = vmatpush3.bf16.msra.mxu0 %v490_v36 }
 0x1d1   :  { %v438_v42 = vadd.f32 %v634_v41, %v269_v23  ;;  %v429_v43 = vpop.f32.mrb[7].mxu1  ;;  %645 = vmatprep.subr.bf16.mxu0 %v707_v12  ;;  %v479_v46 = vmax.f32 %v435_v38, 0.0  ;;  %v502_v23 = vpop.permute.xlu0 %501 }
 0x1d2   :  { %v430_v45 = vadd.f32 %v429_v43, %v259_v18  ;;  %v477_v49 = vmax.f32 %v427_v40, 0.0 }
 0x1d3   :  { %v480_v47 = vmax.f32 %v438_v42, 0.0 }
 0x1d4   :  { %v478_v50 = vmax.f32 %v430_v45, 0.0  ;;  %646 = vmatpush3.bf16.msra.mxu0 %v491_v34 }
 0x1d5   :  { %v493_v51 = vpack.c.bf16 %v480_v47, %v479_v46  ;;  %647 = vmatprep.subr.bf16.mxu0 %v707_v12 }
 0x1d6   :  { %v492_v52 = vpack.c.bf16 %v478_v50, %v477_v49  ;;  %v637_v53 = vpop.f32.mrb[8].mxu1 }
 0x1d7   :  { %v451_v54 = vadd.f32 %v637_v53, %v284_v44  ;;  %v442_v55 = vpop.f32.mrb[9].mxu1 }
 0x1d8   :  { %v443_v57 = vadd.f32 %v442_v55, %v274_v31  ;;  %v638_v58 = vpop.f32.mrb[10].mxu1  ;;  %648 = vmatpush3.bf16.msra.mxu0 %v492_v52 }
 0x1d9   :  { %v454_v59 = vadd.f32 %v638_v58, %v289_v48  ;;  %v445_v60 = vpop.f32.mrb[11].mxu1  ;;  %649 = vmatprep.subr.bf16.mxu0 %v707_v12  ;;  %v483_v63 = vmax.f32 %v451_v54, 0.0 }
 0x1da   :  { %v446_v62 = vadd.f32 %v445_v60, %v279_v35  ;;  %v481_v1 = vmax.f32 %v443_v57, 0.0 }
 0x1db   :  { %v484_v0 = vmax.f32 %v454_v59, 0.0 }
 0x1dc   :  { %v482_v2 = vmax.f32 %v446_v62, 0.0  ;;  %650 = vmatpush3.bf16.msra.mxu0 %v493_v51 }
 0x1dd   :  { %v495_v3 = vpack.c.bf16 %v484_v0, %v483_v63  ;;  %651 = vmatprep.subr.bf16.mxu0 %v707_v12 }
 0x1de   :  { %v494_v5 = vpack.c.bf16 %v482_v2, %v481_v1  ;;  %v641_v6 = vpop.f32.mrb[12].mxu1 }
 0x1df   :  { %v467_v7 = vadd.f32 %v641_v6, %v304_v4  ;;  %v458_v8 = vpop.f32.mrb[13].mxu1 }
 0x1e0   :  { %v459_v10 = vadd.f32 %v458_v8, %v294_v56  ;;  %v642_v11 = vpop.f32.mrb[14].mxu1  ;;  %652 = vmatpush3.bf16.msra.mxu0 %v494_v5 }
 0x1e1   :  { %v470_v13 = vadd.f32 %v642_v11, %v309_v9  ;;  %v461_v14 = vpop.f32.mrb[15].mxu1  ;;  %653 = vmatprep.subr.bf16.mxu0 %v707_v12  ;;  %v487_v16 = vmax.f32 %v467_v7, 0.0 }
 0x1e2   :  { %v462_v15 = vadd.f32 %v461_v14, %v299_v61  ;;  %v485_v18 = vmax.f32 %v459_v10, 0.0 }
 0x1e3   :  { %v488_v17 = vmax.f32 %v470_v13, 0.0 }
 0x1e4   :  { %v486_v19 = vmax.f32 %v462_v15, 0.0  ;;  %654 = vmatpush3.bf16.msra.mxu0 %v495_v3 }
 0x1e5   :  { %v497_v20 = vpack.c.bf16 %v488_v17, %v487_v16  ;;  %655 = vmatprep.subr.bf16.mxu0 %v707_v12 }
 0x1e6   :  { %v496_v21 = vpack.c.bf16 %v486_v19, %v485_v18 }
 0x1e8   :  { %656 = vmatpush3.bf16.msra.mxu0 %v496_v21 }
 0x1e9   :  { %657 = vmatprep.subr.bf16.mxu0 %v707_v12 }
 0x1ec   :  { %658 = vmatpush3.bf16.msra.mxu0 %v497_v20 }
 0x1ef   :  { %660 = vmatmul.mubr.bf16.vlgmr.msra.gmra.mrb[8].mxu0 %v489_v22 }
 0x2c2   :  { %v538_v24 = vpop.f32.mrb[8].mxu0 }
 0x2c3   :  { %v539_v25 = vadd.f32 %v538_v24, %v502_v23  ;;  %v661_v26 = vpop.f32.mrb[9].mxu0 }
 0x2c4   :  { %v541_v27 = vpop.f32.mrb[10].mxu0 }
 0x2c5   :  { %544 = vst [vmem:[#allocation2] sm:$0x3] %v539_v25  ;;  %v662_v28 = vpop.f32.mrb[11].mxu0 }
 0x2c6   :  { %693 = shalt.err (!%p690_p4)
}
 0x2c7   :  { %s694_s26 = scalar_lea.hbm %s907_s7, 32 }
 0x2c8   :  { %p695_p5 = scmp.ne.s32.totalorder %s907_s7, %s694_s26  ;;  %p698_p6 = scmp.lt.u32.totalorder %s694_s26, %s907_s7 }
 0x2ca   :  { %p700_p7 = pnand %p698_p6, %p695_p5 }
 0x2cc   :  { %703 = shalt.err (!%p700_p7)
}
 0x2cd   :  { %554 = dma.vmem_to_hbm [thread:$0]  %s552_s24, 32, %s907_s7, [#allocation3]  }
 0x2ce   :  { %704 = dma.done.wait [#allocation3], 32  }
 0x2cf   :  { %705 = vsyncadd [#allocation3], 4294967264 }
 0x2d0   :  { %558 = vsyncpa [#allocation3], 1 }

</bundles_post_ra>
